<compile_context>
chip_gen: v7x
topology: tpu7x:2x2x1
jax: 0.10.0
libtpu: 0.0.40
codegen_flags: <defaults>
</compile_context>

<pallas_src>
import functools
import math

import jax
import jax.numpy as jnp
from jax.experimental import pallas as pl
from jax.experimental.pallas import tpu as pltpu

EPS = 1e-5  # BatchNorm eps (frozen: running_mean=0, running_var=1, gamma=1, beta=0)


def _rup(x, m):
    return (x + m - 1) // m * m


# ----------------------------------------------------------------------------
# Pallas kernels
# ----------------------------------------------------------------------------
def _mm_kernel(x_ref, w_ref, o_ref, acc_ref, *, relu):
    # conv (as matmul) with frozen-BN already folded into w; optional ReLU.
    k = pl.program_id(2)

    @pl.when(k == 0)
    def _():
        acc_ref[...] = jnp.zeros_like(acc_ref)

    acc_ref[...] += jnp.dot(x_ref[...], w_ref[...],
                            preferred_element_type=jnp.float32)

    @pl.when(k == pl.num_programs(2) - 1)
    def _():
        out = acc_ref[...]
        if relu:
            out = jnp.maximum(out, 0.0)
        o_ref[...] = out.astype(o_ref.dtype)


def _mm_res_kernel(x_ref, w_ref, r_ref, o_ref, acc_ref):
    # conv + (folded BN) + residual add + ReLU  (BasicBlock tail), fully fused.
    k = pl.program_id(2)

    @pl.when(k == 0)
    def _():
        acc_ref[...] = jnp.zeros_like(acc_ref)

    acc_ref[...] += jnp.dot(x_ref[...], w_ref[...],
                            preferred_element_type=jnp.float32)

    @pl.when(k == pl.num_programs(2) - 1)
    def _():
        out = acc_ref[...] + r_ref[...].astype(jnp.float32)
        out = jnp.maximum(out, 0.0)
        o_ref[...] = out.astype(o_ref.dtype)


def _maxpool_kernel(p_ref, o_ref):
    # p_ref: (9, RB, 128) window-stacked values; reduce over the 9 taps.
    o_ref[...] = jnp.max(p_ref[...], axis=0)


# ----------------------------------------------------------------------------
# Tiling / Pallas wrappers
# ----------------------------------------------------------------------------
def _pick_tiles(M, Kp, Np):
    """Adaptive (TM, TN, TK). Kp/Np are already multiples of 128."""
    # 256-wide N tiles only when the layer is big enough to feed a 256x256 MXU.
    TN = 256 if (Np % 256 == 0 and M > 256) else 128
    if M >= 256:
        TM = 128
    elif M > 16 and Np == TN:
        # Single N block: split M in two so both TensorCores (v7x) get a block.
        TM = _rup(_rup(M, 16) // 2, 16)
    else:
        TM = min(128, _rup(M, 16))        # bf16 sublane packing -> multiples of 16
    # TK: largest multiple of 128 dividing Kp, capped so double-buffered bf16
    # tiles stay well inside v7x's 64 MiB VMEM (default scoped limit suffices).
    nk = 1
    while Kp % nk or (Kp // nk) % 128 or (Kp // nk) > 2304:
        nk += 1
    return TM, TN, Kp // nk


def matmul_fused(patches, wp, K, N, *, relu, residual=None):
    """out[m, n] = act(sum_k patches[m,k] * wp[k,n] (+ residual)).

    patches: (M, K) bf16; wp: (Kp, Np) bf16 (pre-padded, BN-folded at init).
    Returns (M, N) bf16.
    """
    M = patches.shape[0]
    Kp, Np = wp.shape
    TM, TN, TK = _pick_tiles(M, Kp, Np)
    Mp = _rup(M, TM)

    xp = jnp.pad(patches, ((0, Mp - M), (0, Kp - K)))  # single bf16 pad copy

    grid = (Mp // TM, Np // TN, Kp // TK)
    x_spec = pl.BlockSpec((TM, TK), lambda i, j, k: (i, k))
    w_spec = pl.BlockSpec((TK, TN), lambda i, j, k: (k, j))
    o_spec = pl.BlockSpec((TM, TN), lambda i, j, k: (i, j))
    cparams = pltpu.CompilerParams(
        dimension_semantics=("parallel", "parallel", "arbitrary"))
    scratch = [pltpu.VMEM((TM, TN), jnp.float32)]
    out_shape = jax.ShapeDtypeStruct((Mp, Np), jnp.bfloat16)

    if residual is None:
        out = pl.pallas_call(
            functools.partial(_mm_kernel, relu=relu),
            out_shape=out_shape,
            grid_spec=pltpu.PrefetchScalarGridSpec(
                num_scalar_prefetch=0, grid=grid,
                in_specs=[x_spec, w_spec],
                out_specs=o_spec,
                scratch_shapes=scratch),
            compiler_params=cparams,
        )(xp, wp)
    else:
        rp = jnp.pad(residual, ((0, Mp - M), (0, Np - N)))
        out = pl.pallas_call(
            _mm_res_kernel,
            out_shape=out_shape,
            grid_spec=pltpu.PrefetchScalarGridSpec(
                num_scalar_prefetch=0, grid=grid,
                in_specs=[x_spec, w_spec, o_spec],  # r block index constant over k
                out_specs=o_spec,
                scratch_shapes=scratch),
            compiler_params=cparams,
        )(xp, wp, rp)
    return out[:M, :N]


def im2col(x, kh, kw, stride, padding):
    """x: (N, H, W, C) bf16 -> patches (N*Ho*Wo, kh*kw*C), Ho, Wo. Order (dy, dx, cin)."""
    N, H, W, C = x.shape
    Ho = (H + 2 * padding - kh) // stride + 1
    Wo = (W + 2 * padding - kw) // stride + 1
    xp = jnp.pad(x, ((0, 0), (padding, padding), (padding, padding), (0, 0)))
    cols = []
    for dy in range(kh):
        for dx in range(kw):
            cols.append(xp[:, dy:dy + stride * (Ho - 1) + 1:stride,
                              dx:dx + stride * (Wo - 1) + 1:stride, :])
    patches = jnp.concatenate(cols, axis=-1)
    return patches.reshape(N * Ho * Wo, kh * kw * C), Ho, Wo


def conv_block(x, p, *, stride, padding, relu, residual=None):
    """Conv2d(bias=False) + frozen BN (folded) (+ ReLU) (+ residual add), NHWC bf16."""
    N = x.shape[0]
    patches, Ho, Wo = im2col(x, p["kh"], p["kw"], stride, padding)
    res_flat = None
    if residual is not None:
        res_flat = residual.reshape(N * Ho * Wo, p["N"])
    out = matmul_fused(patches, p["w"], p["K"], p["N"], relu=relu,
                       residual=res_flat)
    return out.reshape(N, Ho, Wo, p["N"])


def maxpool_3x3_s2_p1(x):
    """MaxPool2d(kernel_size=3, stride=2, padding=1), NHWC bf16, lane-dense kernel."""
    N, H, W, C = x.shape
    Ho = (H + 2 - 3) // 2 + 1
    Wo = (W + 2 - 3) // 2 + 1
    xp = jnp.pad(x, ((0, 0), (1, 1), (1, 1), (0, 0)), constant_values=-jnp.inf)
    wins = [xp[:, dy:dy + 2 * (Ho - 1) + 1:2, dx:dx + 2 * (Wo - 1) + 1:2, :]
            for dy in range(3) for dx in range(3)]
    M = N * Ho * Wo
    p = jnp.stack(wins, axis=0).reshape(9, M, C)

    # Lane-dense view: pack the (M, C) map into rows of exactly 128 lanes.
    Mp = _rup(M, (128 * 128) // math.gcd(128 * 128, C))
    p = jnp.pad(p, ((0, 0), (0, Mp - M), (0, 0)), constant_values=-jnp.inf)
    rows = Mp * C // 128
    p = p.reshape(9, rows, 128)

    out = pl.pallas_call(
        _maxpool_kernel,
        out_shape=jax.ShapeDtypeStruct((rows, 128), x.dtype),
        grid=(rows // 128,),
        in_specs=[pl.BlockSpec((9, 128, 128), lambda i: (0, i, 0))],
        out_specs=pl.BlockSpec((128, 128), lambda i: (i, 0)),
    )(p)
    return out.reshape(Mp, C)[:M].reshape(N, Ho, Wo, C)


# ----------------------------------------------------------------------------
# Parameters (deterministic init matching the PyTorch module's init rules;
# frozen BN is folded into the weights, which are pre-padded + bf16 at init)
# ----------------------------------------------------------------------------
def init_params(key):
    bn_scale = 1.0 / math.sqrt(1.0 + EPS)   # frozen BN: (x-0)/sqrt(1+eps)*1 + 0

    def conv_p(k, kh, kw, cin, cout):
        n = kh * kw * cout
        w = jax.random.normal(k, (kh, kw, cin, cout), jnp.float32) * math.sqrt(2.0 / n)
        w = w * bn_scale                     # fold frozen BatchNorm into the weights
        K = kh * kw * cin
        Kp, Np = _rup(K, 128), _rup(cout, 128)
        wp = jnp.zeros((Kp, Np), jnp.bfloat16).at[:K, :cout].set(
            w.reshape(K, cout).astype(jnp.bfloat16))
        return {"w": wp, "kh": kh, "kw": kw, "K": K, "N": cout}

    keys = iter(jax.random.split(key, 64))
    params = {"conv1": conv_p(next(keys), 7, 7, 3, 64)}

    in_ch = 64
    layers_cfg = [(64, 3, 1), (128, 4, 2), (256, 6, 2), (512, 3, 2)]  # ResNet-34 / BasicBlock
    layers = []
    for planes, nblocks, stride in layers_cfg:
        blocks = []
        for b in range(nblocks):
            s = stride if b == 0 else 1
            blk = {
                "conv1": conv_p(next(keys), 3, 3, in_ch, planes),
                "conv2": conv_p(next(keys), 3, 3, planes, planes),
                "stride": s,
            }
            if s != 1 or in_ch != planes:    # BasicBlock.expansion == 1
                blk["down"] = conv_p(next(keys), 1, 1, in_ch, planes)
            blocks.append(blk)
            in_ch = planes
        layers.append(blocks)
    params["layers"] = layers
    return params


# ----------------------------------------------------------------------------
# Forward pass (ResNet backbone with BasicBlock, frozen BN)
# ----------------------------------------------------------------------------
def basic_block(x, blk):
    stride = blk["stride"]
    if "down" in blk:
        residual = conv_block(x, blk["down"], stride=stride, padding=0, relu=False)
    else:
        residual = x
    out = conv_block(x, blk["conv1"], stride=stride, padding=1, relu=True)
    # conv2 + bn2 + (out += residual) + relu, all fused in one Pallas kernel
    out = conv_block(out, blk["conv2"], stride=1, padding=1, relu=False,
                     residual=residual)
    return out


def resnet_forward(params, img_nchw):
    x = jnp.transpose(img_nchw, (0, 2, 3, 1)).astype(jnp.bfloat16)  # NCHW -> NHWC, bf16

    x = conv_block(x, params["conv1"], stride=2, padding=0, relu=True)  # conv1+bn1+relu
    x = maxpool_3x3_s2_p1(x)

    feats = []
    for blocks in params["layers"]:
        for blk in blocks:
            x = basic_block(x, blk)
        feats.append(x)
    _, x2, x3, x4 = feats

    # TODO(synk): FeaturePyramid / Box_Subnet / Class_Subnet / Anchors /
    # BBoxTransform / ClipBoxes / FocalLoss / nms are not defined in the
    # reference source, so the backbone returns the FPN inputs [x2, x3, x4].
    return tuple(jnp.transpose(f, (0, 3, 1, 2)).astype(jnp.float32)
                 for f in (x2, x3, x4))  # back to NCHW, f32


if __name__ == "__main__":
    key = jax.random.PRNGKey(0)
    pkey, xkey = jax.random.split(key)
    params = init_params(pkey)
    img = jax.random.normal(xkey, (2, 3, 64, 64), jnp.float32)

    outs = resnet_forward(params, img)
    outs = jax.block_until_ready(outs)

    assert outs[0].shape == (2, 128, 8, 8)
    assert outs[1].shape == (2, 256, 4, 4)
    assert outs[2].shape == (2, 512, 2, 2)
    print("KERNEL_OK")
</pallas_src>

<mosaic_0001>
module attributes {stable_mosaic.version = 11 : i64} {
  func.func @_mm_kernel(%arg0: i32, %arg1: i32, %arg2: i32, %arg3: memref<128x256xbf16, #tpu.memory_space<vmem>>, %arg4: memref<256x128xbf16, #tpu.memory_space<vmem>>, %arg5: memref<128x128xbf16, #tpu.memory_space<vmem>>, %arg6: memref<128x128xf32, #tpu.memory_space<vmem>>) attributes {dimension_semantics = [#tpu.dimension_semantics<parallel>, #tpu.dimension_semantics<parallel>, #tpu.dimension_semantics<arbitrary>], iteration_bounds = array<i64: 14, 1, 1>, scalar_prefetch = 0 : i64, scratch_operands = 1 : i64, tpu.core_type = #tpu.core_type<tc>, window_params = [{transform_indices = @transform_0, window_bounds = array<i64: 128, 256>}, {transform_indices = @transform_1, window_bounds = array<i64: 256, 128>}, {transform_indices = @transform_2, window_bounds = array<i64: 128, 128>}]} {
    %c0_i32 = arith.constant 0 : i32
    %0 = arith.cmpi eq, %arg2, %c0_i32 : i32
    %1 = arith.extui %0 : i1 to i32
    %c0_i32_0 = arith.constant 0 : i32
    %2 = arith.cmpi ne, %1, %c0_i32_0 : i32
    scf.if %2 {
      %cst_10 = arith.constant 0.000000e+00 : f32
      %12 = vector.broadcast %cst_10 : f32 to vector<128x128xf32>
      %c0_11 = arith.constant 0 : index
      %c0_12 = arith.constant 0 : index
      %13 = vector.load %arg6[%c0_11, %c0_12] : memref<128x128xf32, #tpu.memory_space<vmem>>, vector<128x128xf32>
      tpu.vector_store %arg6[%c0_11, %c0_12], %12 {strides = array<i32>} : memref<128x128xf32, #tpu.memory_space<vmem>>, vector<128x128xf32>,
    } else {
    }
    %c0 = arith.constant 0 : index
    %c0_1 = arith.constant 0 : index
    %3 = vector.load %arg6[%c0, %c0_1] : memref<128x128xf32, #tpu.memory_space<vmem>>, vector<128x128xf32>
    %c0_2 = arith.constant 0 : index
    %c0_3 = arith.constant 0 : index
    %4 = vector.load %arg3[%c0_2, %c0_3] : memref<128x256xbf16, #tpu.memory_space<vmem>>, vector<128x256xbf16>
    %c0_4 = arith.constant 0 : index
    %c0_5 = arith.constant 0 : index
    %5 = vector.load %arg4[%c0_4, %c0_5] : memref<256x128xbf16, #tpu.memory_space<vmem>>, vector<256x128xbf16>
    %cst = arith.constant dense<0.000000e+00> : vector<128x128xf32>
    %6 = tpu.matmul %4, %5, %cst {dimension_numbers = #tpu.dot_dimension_numbers<[1], [0], [0], [1], [0, 0, 1, 1], [], []>} : vector<128x256xbf16>, vector<256x128xbf16>, vector<128x128xf32> -> vector<128x128xf32>
    %7 = arith.addf %3, %6 : vector<128x128xf32>
    %c0_6 = arith.constant 0 : index
    %c0_7 = arith.constant 0 : index
    %8 = vector.load %arg6[%c0_6, %c0_7] : memref<128x128xf32, #tpu.memory_space<vmem>>, vector<128x128xf32>
    tpu.vector_store %arg6[%c0_6, %c0_7], %7 {strides = array<i32>} : memref<128x128xf32, #tpu.memory_space<vmem>>, vector<128x128xf32>,
    %c0_i32_8 = arith.constant 0 : i32
    %9 = arith.cmpi eq, %arg2, %c0_i32_8 : i32
    %10 = arith.extui %9 : i1 to i32
    %c0_i32_9 = arith.constant 0 : i32
    %11 = arith.cmpi ne, %10, %c0_i32_9 : i32
    scf.if %11 {
      %c0_10 = arith.constant 0 : index
      %c0_11 = arith.constant 0 : index
      %12 = vector.load %arg6[%c0_10, %c0_11] : memref<128x128xf32, #tpu.memory_space<vmem>>, vector<128x128xf32>
      %cst_12 = arith.constant 0.000000e+00 : f32
      %13 = vector.broadcast %cst_12 : f32 to vector<128x128xf32>
      %14 = arith.maximumf %12, %13 : vector<128x128xf32>
      %15 = arith.truncf %14 : vector<128x128xf32> to vector<128x128xbf16>
      %c0_13 = arith.constant 0 : index
      %c0_14 = arith.constant 0 : index
      %16 = vector.load %arg5[%c0_13, %c0_14] : memref<128x128xbf16, #tpu.memory_space<vmem>>, vector<128x128xbf16>
      tpu.vector_store %arg5[%c0_13, %c0_14], %15 {strides = array<i32>} : memref<128x128xbf16, #tpu.memory_space<vmem>>, vector<128x128xbf16>,
    } else {
    }
    return
  }
  func.func @transform_0(%arg0: i32, %arg1: i32, %arg2: i32) -> (i32, i32) {
    %c0_i32 = arith.constant 0 : i32
    return %arg0, %arg2 : i32, i32
  }
  func.func @transform_1(%arg0: i32, %arg1: i32, %arg2: i32) -> (i32, i32) {
    %c0_i32 = arith.constant 0 : i32
    return %arg2, %arg1 : i32, i32
  }
  func.func @transform_2(%arg0: i32, %arg1: i32, %arg2: i32) -> (i32, i32) {
    %c0_i32 = arith.constant 0 : i32
    return %arg0, %arg1 : i32, i32
  }
}

</mosaic_0001>

<bundles_post_ra>
// kernel: tpu_custom_call.1
= control target key start
LH: loop header
LB: loop body
LE: loop exit
PB: predicated region body
PF: predicated region fallthrough
CT: control target
= control target key end

     0   :  { %7 = vsyncpa [#allocation4], 0  ;;  %s1589_s0 = inlined_call_operand.hbm [shape: bf16[1792,256], index: 0, kind: input, shape index: {}]   ;;  %s1590_s1 = inlined_call_operand.hbm [shape: bf16[256,128], index: 1, kind: input, shape index: {}]   ;;  %s1591_s2 = inlined_call_operand.hbm [shape: bf16[1792,128], index: 2, kind: output, shape index: {}]  }
   0x1   :  { %9 = vsyncpa [#allocation4 + $0x1], 0 }
   0x2   :  { %10 = vsyncpa [#allocation7], 0 }
   0x3   :  { %11 = vsyncpa [#allocation5], 0 }
   0x4   :  { %13 = vsyncpa [#allocation5 + $0x1], 0  ;;  %s1342_s9 = smov 0   ;;  %s1344_s10 = smov 0  }
   0x5   :  { %s1346_s11 = smov 0   ;;  %s1348_s12 = smov 0  }
   0x6   :  { %s1350_s13 = smov 0   ;;  %s1352_s14 = smov 0  }
   0x7 LB: > { %s841_s15 = sadd.s32 4294967295, %s1316_s14   ;;  %s842_s16 = sadd.s32 4294967294, %s1316_s14   ;;  %s1316_s14 = sphi %s1352_s14, %s19_s14   ;;  %s1312_s13 = sphi %s1350_s13, %s1614_s13   ;;  %s1308_s12 = sphi %s1348_s12, %s1613_s12   ;;  %s1304_s11 = sphi %s1346_s11, %s1612_s11   ;;  %s1300_s10 = sphi %s1344_s10, %s1611_s10   ;;  %s1296_s9 = sphi %s1342_s9, %s1610_s9  }
   0x8   : > { %p60_p0 = scmp.ne.s32.totalorder %s1300_s10, %s1296_s9  ;;  %p1376_p1 = scmp.eq.s32.totalorder %s841_s15, 0 }
   0x9   : > { %p1380_p2 = scmp.eq.s32.totalorder %s841_s15, 13  ;;  %p120_p3 = scmp.eq.s32.totalorder %s842_s16, 13 }
   0xa   : > { %s1596_s17 = scalar_select %p1376_p1, 1, 0 }
   0xb   : > { %s1597_s18 = scalar_select %p1380_p2, 1, 0 }
   0xc   : > { %p1386_p4 = por %p1376_p1, %p60_p0  ;;  %p843_p5 = scmp.ge.s32.totalorder %s1316_s14, 1 }
   0xd   : > { %p1391_p6 = por %p120_p3, %p60_p0  ;;  %p127_p7 = scmp.lt.s32.totalorder %s1316_s14, 15 }
   0xe   : > { %s1598_s19 = scalar_select %p1386_p4, 1, 0 }
   0xf   : > { %s1599_s20 = scalar_select %p1391_p6, 1, 0 }
  0x10   : > { %p1396_p8 = pnand %p843_p5, %p127_p7  ;;  %s1318_s22 = smov [#allocation6]  }
  0x11   : > { %s143_s23 = sshll.u32 %s1318_s22, 4  ;;  %s38_s25 = sadd.s32 1, %s1312_s13  ;;  %s144_s23 = int_to_ptr.vmem [resolvable:$true] %s143_s23 }
  0x12   : > { %s1600_s21 = scalar_select %p1396_p8, 1, 0 }
  0x13   : > { %p1061_p9 = pneg %p1396_p8  ;;  %s1172_s28 = scalar_lea.hbm %s1590_s1, 2048 }
  0x14   : > { %p1173_p11 = scmp.ne.s32.totalorder %s1590_s1, %s1172_s28  ;;  %p1179_p3 = scmp.lt.u32.totalorder %s1172_s28, %s1590_s1 }
  0x15   : > { %p1404_p10 = pnand %p1061_p9, %p1376_p1 }
  0x17   : > { %p1174_p12 = pneg %p1404_p10 }
  0x19   : > { %p1175_p13 = pnand %p1174_p12, %p1173_p11 }
  0x1b   : > { %p1176_p0 = pneg %p1175_p13 }
  0x1d   : > { %p1181_p5 = pnand %p1179_p3, %p1176_p0 }
  0x1f   : > { %1184 = shalt.err (!%p1181_p5)
}
  0x20   : > { %s1185_s5 = scalar_lea.vmem %s144_s23, 2048  ;;  %p1193_p1 = scmp.lt.s32.totalorder %s144_s23, %s144_s23 }
  0x21   : > { %p1186_p7 = scmp.ne.s32.totalorder %s144_s23, %s1185_s5  ;;  %p1194_p4 = scmp.lt.s32.totalorder %s1185_s5, %s1185_s5 }
  0x23   : > { %p1188_p9 = pnand %p1186_p7, %p1174_p12  ;;  %p1195_p8 = por %p1194_p4, %p1193_p1 }
  0x25   : > { %p1189_p6 = pneg %p1188_p9 }
  0x27   : > { %p1196_p2 = pnand %p1195_p8, %p1189_p6 }
  0x29   : > { %1199 = shalt.err (!%p1196_p2)
}
  0x2a   : > { %s1319_s6 = smov 64   ;;  %s1320_s7 = smov 4  }
  0x2b   : > { %1064 = dma.hbm_to_vmem [thread:$0]  (!%p1404_p10), %s1590_s1, 2048, %s144_s23, [#allocation7], %s1319_s6, %s1319_s6, %s1320_s7  }
  0x2c   : > { %p40_p1 = scmp.ge.s32.totalorder %s38_s25, 14  ;;  %s47_s16 = sadd.s32 1, %s1304_s11 }
  0x2d   : > { %p54_p2 = scmp.ne.s32.totalorder %s1304_s11, %s1300_s10  ;;  %p55_p4 = scmp.eq.s32.totalorder %s1316_s14, 0 }
  0x2e   : > { %s1616_s25 = smov (%p40_p1, %s38_s25), 0  ;;  %p1603_p8 = scmp.ne.s32.totalorder %s1597_s18, 0 }
  0x2f   : > { %p1431_p6 = por %p55_p4, %p54_p2  ;;  %s42_s24 = ssub.s32 %s1312_s13, %s1616_s25 }
  0x30   : > { %p1437_p11 = por %p1603_p8, %p54_p2  ;;  %p1074_p12 = scmp.lt.s32.totalorder %s1316_s14, 14 }
  0x31   : > { %p45_p10 = scmp.eq.s32.totalorder %s42_s24, 0  ;;  %s157_s23 = sand.u32 1, %s1304_s11  }
  0x32   : > { %s846_s27 = sshll.u32 %s157_s23, 7  ;;  %s908_s29 = sshll.u32 %s1312_s13, 11 }
  0x33   : > { %s1446_s28 = scalar_select %p45_p10, %s1304_s11, %s47_s16  }
  0x34   : > { %s1452_s4 = scalar_lea.hbm %s1589_s0, %s908_s29  ;;  %s161_s18 = scalar_lea.vmem [#allocation3], %s846_s27 }
  0x35   : > { %s171_s5 = sshll.u32 %s161_s18, 4  ;;  %p1458_p13 = pnand %p1074_p12, %p1431_p6  ;;  %s1454_s5 = int_to_ptr.vmem [resolvable:$true] %s171_s5 }
  0x36   : > { %s1462_s7 = scalar_lea.sflag [#allocation4], %s157_s23  ;;  %s1200_s8 = scalar_lea.hbm %s1452_s4, 2048 }
  0x37   : > { %p1201_p0 = scmp.ne.s32.totalorder %s1452_s4, %s1200_s8  ;;  %p1202_p3 = pneg %p1458_p13 }
  0x38   : > { %s1205_s22 = scalar_lea.hbm %s1589_s0, 28672  ;;  %p1206_p9 = scmp.lt.u32.totalorder %s1452_s4, %s1589_s0 }
  0x39   : > { %p1203_p5 = pnand %p1202_p3, %p1201_p0  ;;  %p1207_p1 = scmp.lt.u32.totalorder %s1205_s22, %s1200_s8 }
  0x3a   : > { %p1209_p4 = scmp.lt.u32.totalorder %s1200_s8, %s1452_s4 }
  0x3b   : > { %p1204_p7 = pneg %p1203_p5  ;;  %p1208_p2 = por %p1207_p1, %p1206_p9 }
  0x3d   : > { %p1210_p6 = por %p1209_p4, %p1208_p2 }
  0x3f   : > { %p1211_p8 = pnand %p1210_p6, %p1204_p7 }
  0x41   : > { %1214 = shalt.err (!%p1211_p8)
}
  0x42   : > { %s1215_s23 = scalar_lea.vmem %s1454_s5, 2048  ;;  %s1321_s29 = smov [#allocation3]  }
  0x43   : > { %p1216_p12 = scmp.ne.s32.totalorder %s1454_s5, %s1215_s23  ;;  %s1220_s30 = sshll.u32 %s1321_s29, 4  ;;  %s1221_s30 = int_to_ptr.vmem [resolvable:$false] %s1220_s30 }
  0x44   : > { %s1222_s3 = scalar_lea.vmem %s1221_s30, 4096  ;;  %p1223_p5 = scmp.lt.s32.totalorder %s1454_s5, %s1221_s30 }
  0x45   : > { %p1218_p10 = pnand %p1216_p12, %p1202_p3  ;;  %p1224_p9 = scmp.lt.s32.totalorder %s1222_s3, %s1215_s23 }
  0x47   : > { %p1219_p0 = pneg %p1218_p10  ;;  %p1225_p1 = por %p1224_p9, %p1223_p5 }
  0x49   : > { %p1226_p2 = pnand %p1225_p1, %p1219_p0 }
  0x4b   : > { %1229 = shalt.err (!%p1226_p2)
}
  0x4c   : > { %s1322_s18 = smov 128   ;;  %s1323_s8 = smov 8  }
  0x4d   : > { %1068 = dma.hbm_to_vmem [thread:$0]  (!%p1458_p13), %s1452_s4, 2048, %s1454_s5, %s1462_s7, %s1322_s18, %s1322_s18, %s1323_s8  }
  0x4e   : > { %p1606_p3 = scmp.ne.s32.totalorder %s1600_s21, 0 }
  0x4f   : > { %s1493_s15 = sand.u32 (!%p1606_p3), 1, %s1300_s10   ;;  %p1607_p7 = scmp.ne.s32.totalorder (!%p1606_p3), %s1598_s19, 0 }
  0x50   : > { %183 = sbr.rel (%p1606_p3) target bundleno = 384 (0x180), region = 28  ;;  %s851_s16 = sshll.u32 (!%p1606_p3), %s1493_s15, 7 }
  0x51   : > { %s186_s22 = scalar_lea.sflag (!%p1606_p3), [#allocation4], %s1493_s15  ;;  %s1497_s24 = scalar_lea.vmem (!%p1606_p3), [#allocation3], %s851_s16 }
  0x57   : > { %1283 = dma.done.wait (%p1607_p7), %s186_s22, 2048  }
  0x58   : > { %1285 = vsyncadd (%p1607_p7), %s186_s22, 4294965248  ;;  %p1608_p13 = scmp.ne.s32.totalorder %s1596_s17, 0 }
  0x5a   : > { %1287 = dma.done.wait (%p1608_p13), [#allocation7], 2048  }
  0x5b   : > { %1289 = vsyncadd (%p1608_p13), [#allocation7], 4294965248  ;;  %v1132_v0 = vld [vmem:[#allocation6 + $0x40] sm:$0xff]   ;;  %v1134_v2 = vld [vmem:[#allocation6 + $0x48] sm:$0xff]   ;;  %s853_s17 = sshll.u32 %s1493_s15, 6  ;;  %s925_s4 = sshll.u32 %s1308_s12, 10 }
  0x5c   : > { %v1133_v1 = vld [vmem:[#allocation6] sm:$0xff]   ;;  %973 = vmatprep.subr.bf16.mxu0 %v1132_v0  ;;  %1037 = vmatprep.subr.bf16.mxu1 %v1132_v0  ;;  %v1135_v3 = vld [vmem:[#allocation6 + $0x8] sm:$0xff]   ;;  %v1136_v4 = vld [vmem:[#allocation6 + $0x50] sm:$0xff]   ;;  %s1524_s19 = scalar_lea.vmem [#allocation8], %s853_s17  ;;  %s1539_s7 = scalar_lea.hbm %s1591_s2, %s925_s4 }
  0x5d   : > { %974 = vmatpush3.bf16.msra.mxu0 %v1133_v1  ;;  %1045 = vmatpush3.bf16.msra.mxu1 %v1133_v1  ;;  %v1137_v5 = vld [vmem:[#allocation6 + $0x10] sm:$0xff]   ;;  %v1138_v6 = vld [vmem:[#allocation6 + $0x58] sm:$0xff]   ;;  %v1140_v8 = vld [vmem:[#allocation6 + $0x60] sm:$0xff]   ;;  %s738_s21 = sshll.u32 %s1524_s19, 4  ;;  %s724_s27 = scalar_lea.sflag [#allocation5], %s1493_s15  ;;  %s1534_s21 = int_to_ptr.vmem [resolvable:$true] %s738_s21 }
  0x5e   : > { %975 = vmatprep.subr.bf16.mxu0 %v1134_v2  ;;  %1038 = vmatprep.subr.bf16.mxu1 %v1134_v2  ;;  %v1139_v7 = vld [vmem:[#allocation6 + $0x18] sm:$0xff]   ;;  %v1141_v9 = vld [vmem:[#allocation6 + $0x20] sm:$0xff]   ;;  %v1142_v10 = vld [vmem:[#allocation6 + $0x68] sm:$0xff]   ;;  %s1230_s12 = scalar_lea.vmem %s1534_s21, 1024  ;;  %s1324_s23 = smov [#allocation8]  }
  0x5f   : > { %v1150_v11 = vld [vmem:[%s1497_s24 + $0x4] ss:$8 sps:$4 sm:$0xff]   ;;  %v1144_v14 = vld [vmem:[#allocation6 + $0x70] sm:$0xff]   ;;  %v1146_v16 = vld [vmem:[#allocation6 + $0x78] sm:$0xff]   ;;  %p1231_p4 = scmp.ne.s32.totalorder %s1534_s21, %s1230_s12  ;;  %s1234_s29 = sshll.u32 %s1324_s23, 4  ;;  %s1235_s29 = int_to_ptr.vmem [resolvable:$false] %s1234_s29 }
  0x60   : > { %v1153_v12 = vld [vmem:[%s1497_s24 + $0x44] ss:$8 sps:$4 sm:$0xff]   ;;  %511 = vmatprep.mubr.bf16.mxu0 %v1150_v11  ;;  %v1145_v15 = vld [vmem:[#allocation6 + $0x30] sm:$0xff]   ;;  %v1147_v17 = vld [vmem:[#allocation6 + $0x38] sm:$0xff]   ;;  %s1236_s30 = scalar_lea.vmem %s1235_s29, 2048  ;;  %p1237_p12 = scmp.lt.s32.totalorder %s1534_s21, %s1235_s29 }
  0x61   : > { %976 = vmatpush3.bf16.msra.mxu0 %v1135_v3  ;;  %1046 = vmatpush3.bf16.msra.mxu1 %v1135_v3  ;;  %v1143_v13 = vld [vmem:[#allocation6 + $0x28] sm:$0xff]   ;;  %v1154_v20 = vld [vmem:[%s1497_s24 + $0x14] ss:$8 sps:$4 sm:$0xff]   ;;  %v1158_v22 = vld [vmem:[%s1497_s24 + $0x10] ss:$8 sps:$4 sm:$0xff]   ;;  %p1232_p6 = pnand %p1231_p4, %p1437_p11  ;;  %p1238_p10 = scmp.lt.s32.totalorder %s1236_s30, %s1230_s12 }
  0x62   : > { %977 = vmatprep.subr.bf16.mxu0 %v1136_v4  ;;  %1039 = vmatprep.subr.bf16.mxu1 %v1136_v4  ;;  %v1148_v18 = vld [vmem:[%s1497_s24] ss:$8 sps:$4 sm:$0xff]   ;;  %v1156_v21 = vld [vmem:[%s1497_s24 + $0x54] ss:$8 sps:$4 sm:$0xff]   ;;  %v1159_v23 = vld [vmem:[%s1497_s24 + $0x50] ss:$8 sps:$4 sm:$0xff]  }
  0x63   : > { %543 = vmatprep.mubr.bf16.mxu1 %v1153_v12  ;;  %v1151_v19 = vld [vmem:[%s1497_s24 + $0x40] ss:$8 sps:$4 sm:$0xff]   ;;  %v1160_v24 = vld [vmem:[%s1497_s24 + $0x24] ss:$8 sps:$4 sm:$0xff]   ;;  %v1166_v28 = vld [vmem:[%s1497_s24 + $0x34] ss:$8 sps:$4 sm:$0xff]   ;;  %p1233_p8 = pneg %p1232_p6  ;;  %p1239_p0 = por %p1238_p10, %p1237_p12 }
  0x64   : > { %v1162_v25 = vld [vmem:[%s1497_s24 + $0x64] ss:$8 sps:$4 sm:$0xff]   ;;  %v1164_v26 = vld [vmem:[%s1497_s24 + $0x20] ss:$8 sps:$4 sm:$0xff]   ;;  %v1168_v29 = vld [vmem:[%s1497_s24 + $0x74] ss:$8 sps:$4 sm:$0xff]  }
  0x65   : > { %978 = vmatpush3.bf16.msra.mxu0 %v1137_v5  ;;  %1047 = vmatpush3.bf16.msra.mxu1 %v1137_v5  ;;  %v1165_v27 = vld [vmem:[%s1497_s24 + $0x60] ss:$8 sps:$4 sm:$0xff]   ;;  %v1170_v30 = vld [vmem:[%s1497_s24 + $0x30] ss:$8 sps:$4 sm:$0xff]   ;;  %p1240_p5 = pnand %p1239_p0, %p1233_p8 }
  0x66   : > { %979 = vmatprep.subr.bf16.mxu0 %v1138_v6  ;;  %1040 = vmatprep.subr.bf16.mxu1 %v1138_v6  ;;  %v1171_v31 = vld [vmem:[%s1497_s24 + $0x70] ss:$8 sps:$4 sm:$0xff]  }
  0x69   : > { %980 = vmatpush3.bf16.msra.mxu0 %v1139_v7  ;;  %1048 = vmatpush3.bf16.msra.mxu1 %v1139_v7 }
  0x6a   : > { %981 = vmatprep.subr.bf16.mxu0 %v1140_v8  ;;  %1041 = vmatprep.subr.bf16.mxu1 %v1140_v8 }
  0x6d   : > { %982 = vmatpush3.bf16.msra.mxu0 %v1141_v9  ;;  %1049 = vmatpush3.bf16.msra.mxu1 %v1141_v9 }
  0x6e   : > { %983 = vmatprep.subr.bf16.mxu0 %v1142_v10  ;;  %1042 = vmatprep.subr.bf16.mxu1 %v1142_v10 }
  0x71   : > { %984 = vmatpush3.bf16.msra.mxu0 %v1143_v13  ;;  %1050 = vmatpush3.bf16.msra.mxu1 %v1143_v13 }
  0x72   : > { %985 = vmatprep.subr.bf16.mxu0 %v1144_v14  ;;  %1043 = vmatprep.subr.bf16.mxu1 %v1144_v14 }
  0x75   : > { %986 = vmatpush3.bf16.msra.mxu0 %v1145_v15  ;;  %1051 = vmatpush3.bf16.msra.mxu1 %v1145_v15 }
  0x76   : > { %987 = vmatprep.subr.bf16.mxu0 %v1146_v16  ;;  %1044 = vmatprep.subr.bf16.mxu1 %v1146_v16 }
  0x79   : > { %988 = vmatpush3.bf16.msra.mxu0 %v1147_v17  ;;  %1052 = vmatpush3.bf16.msra.mxu1 %v1147_v17 }
  0x7c   : > { %512 = vmatmul.mubr.bf16.vlgmr.msra.gmra.mrb[0].mxu0 %v1148_v18  ;;  %544 = vmatmul.mubr.bf16.vlgmr.msra.gmra.mrb[0].mxu1 %v1151_v19 }
  0x7d   : > { %519 = vmatprep.mubr.bf16.mxu0 %v1154_v20  ;;  %551 = vmatprep.mubr.bf16.mxu1 %v1156_v21 }
  0x84   : > { %520 = vmatmul.mubr.bf16.gmra.mrb[4].mxu0 %v1158_v22  ;;  %552 = vmatmul.mubr.bf16.gmra.mrb[4].mxu1 %v1159_v23 }
  0x85   : > { %527 = vmatprep.mubr.bf16.mxu0 %v1160_v24  ;;  %559 = vmatprep.mubr.bf16.mxu1 %v1162_v25 }
  0x8c   : > { %528 = vmatmul.mubr.bf16.gmra.mrb[8].mxu0 %v1164_v26  ;;  %560 = vmatmul.mubr.bf16.gmra.mrb[8].mxu1 %v1165_v27 }
  0x8d   : > { %535 = vmatprep.mubr.bf16.mxu0 %v1166_v28  ;;  %567 = vmatprep.mubr.bf16.mxu1 %v1168_v29 }
  0x94   : > { %536 = vmatmul.mubr.bf16.gmra.mrb[12].mxu0 %v1170_v30  ;;  %568 = vmatmul.mubr.bf16.gmra.mrb[12].mxu1 %v1171_v31 }
 0x14f   : > { %v989_v32 = vpop.f32.mrb[0].mxu0  ;;  %v1013_v33 = vpop.f32.mrb[0].mxu1 }
 0x150   : > { %v990_v34 = vpop.f32.mrb[1].mxu0  ;;  %v1014_v35 = vpop.f32.mrb[1].mxu1 }
 0x151   : > { %v991_v36 = vadd.f32 %v990_v34, %v989_v32  ;;  %v1015_v37 = vadd.f32 %v1014_v35, %v1013_v33  ;;  %v992_v38 = vpop.f32.mrb[2].mxu0  ;;  %v1016_v39 = vpop.f32.mrb[2].mxu1 }
 0x152   : > { %v993_v40 = vpop.f32.mrb[3].mxu0  ;;  %v1017_v41 = vpop.f32.mrb[3].mxu1 }
 0x153   : > { %v994_v42 = vadd.f32 %v993_v40, %v992_v38  ;;  %v1018_v43 = vadd.f32 %v1017_v41, %v1016_v39  ;;  %v627_v44 = vmax.f32 %v991_v36, 0.0  ;;  %v635_v45 = vmax.f32 %v1015_v37, 0.0 }
 0x155   : > { %v628_v46 = vmax.f32 %v994_v42, 0.0  ;;  %v636_v47 = vmax.f32 %v1018_v43, 0.0 }
 0x157   : > { %v929_v48 = vpack.c.bf16 %v628_v46, %v627_v44  ;;  %v949_v49 = vpack.c.bf16 %v636_v47, %v635_v45  ;;  %v995_v50 = vpop.f32.mrb[4].mxu0  ;;  %v1019_v51 = vpop.f32.mrb[4].mxu1 }
 0x158   : > { %v996_v52 = vpop.f32.mrb[5].mxu0  ;;  %v1020_v53 = vpop.f32.mrb[5].mxu1 }
 0x159   : > { %930 = vst [vmem:[%s1524_s19] sm:$0xff] %v929_v48   ;;  %969 = vst [vmem:[%s1524_s19 + $0x20] sm:$0xff] %v949_v49   ;;  %v997_v54 = vadd.f32 %v996_v52, %v995_v50  ;;  %v1021_v55 = vadd.f32 %v1020_v53, %v1019_v51  ;;  %v998_v56 = vpop.f32.mrb[6].mxu0  ;;  %v1022_v57 = vpop.f32.mrb[6].mxu1 }
 0x15a   : > { %v999_v58 = vpop.f32.mrb[7].mxu0  ;;  %v1023_v59 = vpop.f32.mrb[7].mxu1 }
 0x15b   : > { %v1000_v60 = vadd.f32 %v999_v58, %v998_v56  ;;  %v1024_v61 = vadd.f32 %v1023_v59, %v1022_v57  ;;  %v629_v62 = vmax.f32 %v997_v54, 0.0  ;;  %v637_v63 = vmax.f32 %v1021_v55, 0.0 }
 0x15d   : > { %v630_v0 = vmax.f32 %v1000_v60, 0.0  ;;  %v638_v1 = vmax.f32 %v1024_v61, 0.0 }
 0x15f   : > { %v934_v2 = vpack.c.bf16 %v630_v0, %v629_v62  ;;  %v954_v3 = vpack.c.bf16 %v638_v1, %v637_v63  ;;  %v1001_v4 = vpop.f32.mrb[8].mxu0  ;;  %v1025_v5 = vpop.f32.mrb[8].mxu1 }
 0x160   : > { %v1002_v6 = vpop.f32.mrb[9].mxu0  ;;  %v1026_v7 = vpop.f32.mrb[9].mxu1 }
 0x161   : > { %966 = vst [vmem:[%s1524_s19 + $0x8] sm:$0xff] %v934_v2   ;;  %970 = vst [vmem:[%s1524_s19 + $0x28] sm:$0xff] %v954_v3   ;;  %v1003_v8 = vadd.f32 %v1002_v6, %v1001_v4  ;;  %v1027_v9 = vadd.f32 %v1026_v7, %v1025_v5  ;;  %v1004_v10 = vpop.f32.mrb[10].mxu0  ;;  %v1028_v11 = vpop.f32.mrb[10].mxu1 }
 0x162   : > { %v1005_v12 = vpop.f32.mrb[11].mxu0  ;;  %v1029_v13 = vpop.f32.mrb[11].mxu1 }
 0x163   : > { %v1006_v14 = vadd.f32 %v1005_v12, %v1004_v10  ;;  %v1030_v15 = vadd.f32 %v1029_v13, %v1028_v11  ;;  %v631_v16 = vmax.f32 %v1003_v8, 0.0  ;;  %v639_v17 = vmax.f32 %v1027_v9, 0.0 }
 0x165   : > { %v632_v18 = vmax.f32 %v1006_v14, 0.0  ;;  %v640_v19 = vmax.f32 %v1030_v15, 0.0 }
 0x167   : > { %v939_v20 = vpack.c.bf16 %v632_v18, %v631_v16  ;;  %v959_v21 = vpack.c.bf16 %v640_v19, %v639_v17  ;;  %v1007_v22 = vpop.f32.mrb[12].mxu0  ;;  %v1031_v23 = vpop.f32.mrb[12].mxu1 }
 0x168   : > { %v1008_v24 = vpop.f32.mrb[13].mxu0  ;;  %v1032_v25 = vpop.f32.mrb[13].mxu1 }
 0x169   : > { %967 = vst [vmem:[%s1524_s19 + $0x10] sm:$0xff] %v939_v20   ;;  %971 = vst [vmem:[%s1524_s19 + $0x30] sm:$0xff] %v959_v21   ;;  %v1009_v26 = vadd.f32 %v1008_v24, %v1007_v22  ;;  %v1033_v27 = vadd.f32 %v1032_v25, %v1031_v23  ;;  %v1010_v28 = vpop.f32.mrb[14].mxu0  ;;  %v1034_v29 = vpop.f32.mrb[14].mxu1 }
 0x16a   : > { %v1011_v30 = vpop.f32.mrb[15].mxu0  ;;  %v1035_v31 = vpop.f32.mrb[15].mxu1 }
 0x16b   : > { %v1012_v32 = vadd.f32 %v1011_v30, %v1010_v28  ;;  %v1036_v33 = vadd.f32 %v1035_v31, %v1034_v29  ;;  %v633_v34 = vmax.f32 %v1009_v26, 0.0  ;;  %v641_v35 = vmax.f32 %v1033_v27, 0.0 }
 0x16d   : > { %v634_v36 = vmax.f32 %v1012_v32, 0.0  ;;  %v642_v37 = vmax.f32 %v1036_v33, 0.0 }
 0x16f   : > { %v944_v38 = vpack.c.bf16 %v634_v36, %v633_v34  ;;  %v964_v39 = vpack.c.bf16 %v642_v37, %v641_v35 }
 0x171   : > { %968 = vst [vmem:[%s1524_s19 + $0x18] sm:$0xff] %v944_v38   ;;  %972 = vst [vmem:[%s1524_s19 + $0x38] sm:$0xff] %v964_v39  }
 0x172   : > { %1243 = shalt.err (!%p1240_p5)
}
 0x173   : > { %s1244_s3 = scalar_lea.hbm %s1539_s7, 1024  ;;  %s1248_s16 = scalar_lea.hbm %s1591_s2, 14336 }
 0x174   : > { %p1245_p9 = scmp.ne.s32.totalorder %s1539_s7, %s1244_s3  ;;  %p1249_p3 = scmp.lt.u32.totalorder %s1539_s7, %s1591_s2 }
 0x175   : > { %p1250_p7 = scmp.lt.u32.totalorder %s1248_s16, %s1244_s3  ;;  %p1252_p4 = scmp.lt.u32.totalorder %s1244_s3, %s1539_s7 }
 0x176   : > { %p1246_p1 = pnand %p1245_p9, %p1437_p11 }
 0x177   : > { %p1251_p13 = por %p1250_p7, %p1249_p3 }
 0x178   : > { %p1247_p2 = pneg %p1246_p1 }
 0x179   : > { %p1253_p6 = por %p1252_p4, %p1251_p13 }
 0x17b   : > { %p1254_p8 = pnand %p1253_p6, %p1247_p2 }
 0x17d   : > { %1257 = shalt.err (!%p1254_p8)
}
 0x17e   : > { %s1325_s17 = smov 64   ;;  %s1326_s19 = smov 4  }
 0x17f   : > { %1059 = dma.vmem_to_hbm [thread:$0]  (%p1437_p11), %s1534_s21, 1024, %s1539_s7, %s724_s27, %s1325_s17, %s1325_s17, %s1326_s19  }
 0x180 PF: > { %p1076_p12 = scmp.ge.s32.totalorder %s1316_s14, 2  ;;  %s753_s4 = sand.u32 1, %s1296_s9  }
 0x181   : > { %p1609_p10 = scmp.ne.s32.totalorder %s1599_s20, 0  ;;  %s754_s5 = scalar_lea.sflag [#allocation5], %s753_s4 }
 0x183   : > { %p1070_p0 = pnand %p1076_p12, %p1609_p10 }
 0x185   : > { %1291 = dma.done.wait (!%p1070_p0), %s754_s5, 1024  }
 0x186   : > { %1293 = vsyncadd (!%p1070_p0), %s754_s5, 4294966272  ;;  %s19_s14 = sadd.s32 1, %s1316_s14   ;;  %s1610_s9 = smov %s1300_s10 }
 0x187   : > { %p16_p5 = scmp.ge.s32.totalorder %s19_s14, 16   ;;  %s1611_s10 = smov %s1304_s11 }
 0x188   : > { %s1612_s11 = smov %s1446_s28  ;;  %s1613_s12 = smov %s1312_s13 }
 0x189   : > { %s1614_s13 = smov %s1616_s25  ;;  %18 = sbr.rel (!%p16_p5) target bundleno = 7 (0x7), region = 86 }
 0x190   :  { %759 = vsyncpa [#allocation4], 1 }
 0x191   :  { %761 = vsyncpa [#allocation4 + $0x1], 1 }
 0x192   :  { %762 = vsyncpa [#allocation7], 1 }
 0x193   :  { %763 = vsyncpa [#allocation5], 1 }
 0x194   :  { %765 = vsyncpa [#allocation5 + $0x1], 1 }

</bundles_post_ra>
